<compile_context>
chip_gen: v7x
topology: tpu7x:2x2x1
jax: 0.10.0
libtpu: 0.0.40
codegen_flags: <defaults>
</compile_context>

<pallas_src>
import functools

import jax
import jax.numpy as jnp
from jax import lax
from jax.experimental import pallas as pl
from jax.experimental.pallas import tpu as pltpu


def _round_up(x, m):
    return ((x + m - 1) // m) * m


def _cdiv(x, m):
    return (x + m - 1) // m


def readout_kernel(x_ref, w_ref, b_ref, o_ref, acc_ref, *,
                   n_nodes, n_packed, needs_mask):
    """One (batch-tile, packed-node-tile) grid step.

    x_ref:   (TB, TNP, DP)    lane-packed input tile (DP = g * D_in)
    w_ref:   (DP, DOUT_PAD)   weight replicated g times along rows (resident)
    b_ref:   (1, DOUT_PAD)    bias (resident)
    o_ref:   (TB, DOUT_PAD)   lane-dense output slab (resident across k axis)
    acc_ref: (TB, 8, DP) f32  vreg-aligned partial sums over packed nodes
    """
    k = pl.program_id(1)
    tb, tnp, dp = x_ref.shape

    @pl.when(k == 0)
    def _init():
        acc_ref[...] = jnp.zeros_like(acc_ref)

    x = x_ref[...].astype(jnp.float32)
    if needs_mask:
        # Zero out-of-bounds packed-node rows of the ragged last node tile
        # (partial-block OOB reads are undefined, so this is mandatory).
        idx = k * tnp + lax.broadcasted_iota(jnp.int32, (tnp, 1), 0)
        x = jnp.where((idx < n_packed)[None, :, :], x, 0.0)

    # Hot loop: plain vadds into the vreg-aligned accumulator; the
    # cross-sublane reduce is deferred to the once-per-batch-tile finalize.
    if tnp == 8:
        part = x
    else:
        part = jnp.sum(x.reshape(tb, tnp // 8, 8, dp), axis=1)
    acc_ref[...] += part

    @pl.when(k == pl.num_programs(1) - 1)
    def _finalize():
        s = jnp.sum(acc_ref[...], axis=1)                  # (TB, DP), one xlane reduce
        # W is replicated g times along its rows, so this matmul also folds the
        # g lane-packed segments back onto D_in:  (sum_n x_n) @ W.
        y = jnp.dot(s, w_ref[...], preferred_element_type=jnp.float32)
        y = y + jnp.float32(n_nodes) * b_ref[...]          # bias scaled by true N
        o_ref[...] = jnp.maximum(y, 0.0).astype(o_ref.dtype)


def readout(x, w, b, *, tb=64, target_tile_bytes=8 << 20):
    """Readout forward: relu(sum_n(x @ W + b)).  x: (B, N, D_in) -> (B, D_out)."""
    B, N, D_in = x.shape
    D_out = w.shape[1]
    itemsize = jnp.dtype(x.dtype).itemsize

    # --- Lane-pack D_in into the 128-lane axis (free contiguous reshape). ----
    if D_in <= 128 and 128 % D_in == 0 and N % (128 // D_in) == 0:
        g = 128 // D_in
    else:
        g = 1
    n_p = N // g                       # packed node count
    d_p = g * D_in                     # packed feature width (== 128 when packed)
    xp = x.reshape(B, n_p, d_p) if g > 1 else x

    # --- Lane-dense output + replicated weight (matmul folds the g segments).
    d_out_pad = _round_up(D_out, 128)
    wp = jnp.pad(w.astype(jnp.float32), ((0, 0), (0, d_out_pad - D_out)))
    w_rep = jnp.tile(wp, (g, 1)) if g > 1 else wp           # (d_p, d_out_pad)
    bp = jnp.pad(b.astype(jnp.float32), (0, d_out_pad - D_out)).reshape(1, d_out_pad)

    # --- Tile selection. -----------------------------------------------------
    # Batch tile: >= 8 sublane rows; keep >= 2 parallel tiles for v7x when B allows.
    tb_eff = min(_round_up(B, 8), tb)
    num_b = _cdiv(B, tb_eff)
    if num_b == 1 and B > 8:
        tb_eff = _round_up(_cdiv(B, 2), 8)
        num_b = _cdiv(B, tb_eff)
    b_pad = num_b * tb_eff

    # Packed-node tile: multiple of 8 sublanes, sized so one x buffer is
    # ~target_tile_bytes; double-buffered x plus w/b/acc/out stays well inside
    # the 32 MiB scoped-VMEM budget that is safe on v5e / v6e / v7x alike.
    tn_max = _round_up(n_p, 8)
    tn_fit = (target_tile_bytes // (tb_eff * d_p * itemsize)) // 8 * 8
    tn_p = int(min(tn_max, max(8, tn_fit)))
    num_k = _cdiv(n_p, tn_p)
    needs_mask = (n_p % tn_p) != 0     # ragged last node tile -> mask in-kernel

    kernel = functools.partial(readout_kernel, n_nodes=N, n_packed=n_p,
                               needs_mask=needs_mask)

    # TODO(synk): stream x in bf16 when the producer already emits bf16 (the
    # kernel accumulates in f32); do NOT cast here — that would add an extra
    # full HBM pass over x and erase the bandwidth win.
    out = pl.pallas_call(
        kernel,
        out_shape=jax.ShapeDtypeStruct((b_pad, d_out_pad), x.dtype),
        grid_spec=pltpu.PrefetchScalarGridSpec(
            num_scalar_prefetch=0,
            grid=(num_b, num_k),
            in_specs=[
                # If profiling still shows exposed DMA at these tile sizes,
                # add pipeline_mode=pl.Buffered(3) to this spec.
                pl.BlockSpec((tb_eff, tn_p, d_p), lambda i, k: (i, k, 0)),
                pl.BlockSpec((d_p, d_out_pad), lambda i, k: (0, 0)),
                pl.BlockSpec((1, d_out_pad), lambda i, k: (0, 0)),
            ],
            out_specs=pl.BlockSpec((tb_eff, d_out_pad), lambda i, k: (i, 0)),
            scratch_shapes=[pltpu.VMEM((tb_eff, 8, d_p), jnp.float32)],
        ),
        compiler_params=pltpu.CompilerParams(
            dimension_semantics=("parallel", "arbitrary"),
            vmem_limit_bytes=32 * 1024 * 1024,
        ),
    )(xp, w_rep, bp)

    return out[:B, :D_out]


if __name__ == "__main__":
    # Small shapes: batch=2 graphs, N=8 nodes each, in_dim=32, out_dim=16.
    B, N, D_in, D_out = 2, 8, 32, 16

    key = jax.random.PRNGKey(0)
    kx, kw, kb = jax.random.split(key, 3)

    x = jax.random.normal(kx, (B, N, D_in), dtype=jnp.float32)

    # Deterministic parameter init mimicking nn.Linear (uniform(-1/sqrt(in), 1/sqrt(in))).
    bound = 1.0 / (D_in ** 0.5)
    w = jax.random.uniform(kw, (D_in, D_out), minval=-bound, maxval=bound,
                           dtype=jnp.float32)
    b = jax.random.uniform(kb, (D_out,), minval=-bound, maxval=bound,
                           dtype=jnp.float32)

    out = readout(x, w, b)
    out = jax.block_until_ready(out)

    # Reference check in plain JAX (Linear -> sum over axis 1 -> ReLU).
    ref = jnp.maximum(jnp.sum(jnp.einsum("bnd,de->bne", x, w) + b, axis=1), 0.0)
    assert out.shape == (B, D_out)
    assert jnp.allclose(out, ref, atol=1e-4, rtol=1e-4)

    print("KERNEL_OK")
</pallas_src>

<mosaic_0001>
module attributes {stable_mosaic.version = 11 : i64} {
  func.func @readout_kernel(%arg0: i32, %arg1: i32, %arg2: memref<8x8x128xf32, #tpu.memory_space<vmem>>, %arg3: memref<128x128xf32, #tpu.memory_space<vmem>>, %arg4: memref<1x128xf32, #tpu.memory_space<vmem>>, %arg5: memref<8x128xf32, #tpu.memory_space<vmem>>, %arg6: memref<8x8x128xf32, #tpu.memory_space<vmem>>) attributes {dimension_semantics = [#tpu.dimension_semantics<parallel>, #tpu.dimension_semantics<arbitrary>], iteration_bounds = array<i64: 1, 1>, scalar_prefetch = 0 : i64, scratch_operands = 1 : i64, tpu.core_type = #tpu.core_type<tc>, window_params = [{transform_indices = @transform_0, window_bounds = array<i64: 8, 8, 128>}, {pipeline_mode = #tpu.pipeline_mode<synchronous>, transform_indices = @transform_1, window_bounds = array<i64: 128, 128>}, {pipeline_mode = #tpu.pipeline_mode<synchronous>, transform_indices = @transform_2, window_bounds = array<i64: 1, 128>}, {transform_indices = @transform_3, window_bounds = array<i64: 8, 128>}]} {
    %c0_i32 = arith.constant 0 : i32
    %0 = arith.cmpi eq, %arg1, %c0_i32 : i32
    %1 = arith.extui %0 : i1 to i32
    %c0_i32_0 = arith.constant 0 : i32
    %2 = arith.cmpi ne, %1, %c0_i32_0 : i32
    scf.if %2 {
      %cst_11 = arith.constant 0.000000e+00 : f32
      %21 = vector.broadcast %cst_11 : f32 to vector<8x8x128xf32>
      %c0_12 = arith.constant 0 : index
      %c0_13 = arith.constant 0 : index
      %c0_14 = arith.constant 0 : index
      %22 = vector.load %arg6[%c0_12, %c0_13, %c0_14] : memref<8x8x128xf32, #tpu.memory_space<vmem>>, vector<8x8x128xf32>
      tpu.vector_store %arg6[%c0_12, %c0_13, %c0_14], %21 {strides = array<i32>} : memref<8x8x128xf32, #tpu.memory_space<vmem>>, vector<8x8x128xf32>,
    } else {
    }
    %c0 = arith.constant 0 : index
    %c0_1 = arith.constant 0 : index
    %c0_2 = arith.constant 0 : index
    %3 = vector.load %arg2[%c0, %c0_1, %c0_2] : memref<8x8x128xf32, #tpu.memory_space<vmem>>, vector<8x8x128xf32>
    %c8_i32 = arith.constant 8 : i32
    %4 = arith.muli %arg1, %c8_i32 : i32
    %5 = tpu.iota {dimensions = array<i32: 0>} : vector<8x1xi32>
    %6 = vector.broadcast %4 : i32 to vector<8x1xi32>
    %7 = arith.addi %6, %5 : vector<8x1xi32>
    %c2_i32 = arith.constant 2 : i32
    %8 = vector.broadcast %c2_i32 : i32 to vector<8x1xi32>
    %9 = arith.cmpi slt, %7, %8 : vector<8x1xi32>
    %10 = vector.shape_cast %9 : vector<8x1xi1> to vector<1x8x1xi1>
    %cst = arith.constant 0.000000e+00 : f32
    %11 = vector.shape_cast %10 : vector<1x8x1xi1> to vector<1x8x1xi1>
    %12 = vector.broadcast %11 : vector<1x8x1xi1> to vector<8x8x128xi1>
    %13 = vector.broadcast %cst : f32 to vector<8x8x128xf32>
    %14 = arith.select %12, %3, %13 : vector<8x8x128xi1>, vector<8x8x128xf32>
    %c0_3 = arith.constant 0 : index
    %c0_4 = arith.constant 0 : index
    %c0_5 = arith.constant 0 : index
    %15 = vector.load %arg6[%c0_3, %c0_4, %c0_5] : memref<8x8x128xf32, #tpu.memory_space<vmem>>, vector<8x8x128xf32>
    %16 = arith.addf %15, %14 : vector<8x8x128xf32>
    %c0_6 = arith.constant 0 : index
    %c0_7 = arith.constant 0 : index
    %c0_8 = arith.constant 0 : index
    %17 = vector.load %arg6[%c0_6, %c0_7, %c0_8] : memref<8x8x128xf32, #tpu.memory_space<vmem>>, vector<8x8x128xf32>
    tpu.vector_store %arg6[%c0_6, %c0_7, %c0_8], %16 {strides = array<i32>} : memref<8x8x128xf32, #tpu.memory_space<vmem>>, vector<8x8x128xf32>,
    %c0_i32_9 = arith.constant 0 : i32
    %18 = arith.cmpi eq, %arg1, %c0_i32_9 : i32
    %19 = arith.extui %18 : i1 to i32
    %c0_i32_10 = arith.constant 0 : i32
    %20 = arith.cmpi ne, %19, %c0_i32_10 : i32
    scf.if %20 {
      %c0_11 = arith.constant 0 : index
      %c0_12 = arith.constant 0 : index
      %c0_13 = arith.constant 0 : index
      %21 = vector.load %arg6[%c0_11, %c0_12, %c0_13] : memref<8x8x128xf32, #tpu.memory_space<vmem>>, vector<8x8x128xf32>
      %cst_14 = arith.constant dense<0.000000e+00> : vector<8x128xf32>
      %22 = vector.multi_reduction <add>, %21, %cst_14 [1] : vector<8x8x128xf32> to vector<8x128xf32>
      %c0_15 = arith.constant 0 : index
      %c0_16 = arith.constant 0 : index
      %23 = vector.load %arg3[%c0_15, %c0_16] : memref<128x128xf32, #tpu.memory_space<vmem>>, vector<128x128xf32>
      %cst_17 = arith.constant dense<0.000000e+00> : vector<8x128xf32>
      %24 = tpu.matmul %22, %23, %cst_17 {dimension_numbers = #tpu.dot_dimension_numbers<[1], [0], [0], [1], [0, 0, 1, 1], [], []>} : vector<8x128xf32>, vector<128x128xf32>, vector<8x128xf32> -> vector<8x128xf32>
      %c0_18 = arith.constant 0 : index
      %c0_19 = arith.constant 0 : index
      %25 = vector.load %arg4[%c0_18, %c0_19] : memref<1x128xf32, #tpu.memory_space<vmem>>, vector<1x128xf32>
      %cst_20 = arith.constant 8.000000e+00 : f32
      %26 = vector.broadcast %cst_20 : f32 to vector<1x128xf32>
      %27 = arith.mulf %26, %25 : vector<1x128xf32>
      %28 = vector.broadcast %27 : vector<1x128xf32> to vector<8x128xf32>
      %29 = arith.addf %24, %28 : vector<8x128xf32>
      %cst_21 = arith.constant 0.000000e+00 : f32
      %30 = vector.broadcast %cst_21 : f32 to vector<8x128xf32>
      %31 = arith.maximumf %29, %30 : vector<8x128xf32>
      %c0_22 = arith.constant 0 : index
      %c0_23 = arith.constant 0 : index
      %32 = vector.load %arg5[%c0_22, %c0_23] : memref<8x128xf32, #tpu.memory_space<vmem>>, vector<8x128xf32>
      tpu.vector_store %arg5[%c0_22, %c0_23], %31 {strides = array<i32>} : memref<8x128xf32, #tpu.memory_space<vmem>>, vector<8x128xf32>,
    } else {
    }
    return
  }
  func.func @transform_0(%arg0: i32, %arg1: i32) -> (i32, i32, i32) {
    %c0_i32 = arith.constant 0 : i32
    %c0_i32_0 = arith.constant 0 : i32
    return %arg0, %arg1, %c0_i32 : i32, i32, i32
  }
  func.func @transform_1(%arg0: i32, %arg1: i32) -> (i32, i32) {
    %c0_i32 = arith.constant 0 : i32
    %c0_i32_0 = arith.constant 0 : i32
    %c0_i32_1 = arith.constant 0 : i32
    return %c0_i32, %c0_i32_0 : i32, i32
  }
  func.func @transform_2(%arg0: i32, %arg1: i32) -> (i32, i32) {
    %c0_i32 = arith.constant 0 : i32
    %c0_i32_0 = arith.constant 0 : i32
    %c0_i32_1 = arith.constant 0 : i32
    return %c0_i32, %c0_i32_0 : i32, i32
  }
  func.func @transform_3(%arg0: i32, %arg1: i32) -> (i32, i32) {
    %c0_i32 = arith.constant 0 : i32
    %c0_i32_0 = arith.constant 0 : i32
    return %arg0, %c0_i32 : i32, i32
  }
}

</mosaic_0001>

<bundles_post_ra>
// kernel: tpu_custom_call.1
= control target key start
LH: loop header
LB: loop body
LE: loop exit
PB: predicated region body
PF: predicated region fallthrough
CT: control target
= control target key end

     0   :  { %8 = vsyncpa [#allocation4], 0  ;;  %s563_s0 = inlined_call_operand.hbm [shape: f32[2,2,128], index: 0, kind: input, shape index: {}]   ;;  %s564_s1 = inlined_call_operand.hbm [shape: f32[128,128], index: 1, kind: input, shape index: {}]   ;;  %s565_s2 = inlined_call_operand.vmem [shape: f32[1,128], index: 2, kind: input, shape index: {}]   ;;  %s566_s3 = inlined_call_operand.hbm [shape: f32[8,128], index: 3, kind: output, shape index: {}]  }
   0x1   :  { %9 = vsyncpa [#allocation7], 0 }
   0x2   :  { %10 = vsyncpa [#allocation5], 0 }
   0x3   :  { %15 = vsyncadd [#allocation4], 960  ;;  %s20_s12 = sld [smem:[#allocation0]]   ;;  %s464_s13 = smov [#allocation3]  }
   0x4   :  { %s28_s14 = sshll.u32 %s464_s13, 4  ;;  %s465_s15 = smov 32   ;;  %s29_s14 = int_to_ptr.vmem [resolvable:$true] %s28_s14 }
   0x5   :  { %35 = sst [smem:[#allocation10]] %s465_s15  ;;  %s466_s16 = smov 128  }
   0x6   :  { %37 = sst [smem:[#allocation10 + $0x1]] %s466_s16  ;;  %s467_s17 = smov 1  }
   0x7   :  { %39 = sst [smem:[#allocation10 + $0x2]] %s467_s17  ;;  %s468_s20 = smov 2  }
   0x8   :  { %41 = sst [smem:[#allocation10 + $0x3]] %s465_s15  ;;  %s469_s21 = smov [#allocation4]  }
   0x9   :  { %s322_s18 = sshll.u32 %s20_s12, 26  ;;  %43 = sst [smem:[#allocation10 + $0x4]] %s465_s15 }
   0xa   :  { %s323_s19 = sadd.s32 134217728, %s322_s18  ;;  %45 = sst [smem:[#allocation10 + $0x5]] %s468_s20 }
   0xb   :  { %s470_s22 = smov [#allocation9]   ;;  %s471_s25 = smov [#allocation6]  }
   0xc   :  { %47 = dma.general %s563_s0, 64, %s29_s14, %s469_s21, %s470_s22, [#allocation10], %s323_s19, 0  }
   0xd   :  { %s53_s26 = sshll.u32 %s471_s25, 4  ;;  %s414_s29 = scalar_lea.hbm %s564_s1, 2048  ;;  %s54_s26 = int_to_ptr.vmem [resolvable:$true] %s53_s26 }
   0xe   :  { %p415_p0 = scmp.ne.s32.totalorder %s564_s1, %s414_s29  ;;  %p418_p1 = scmp.lt.u32.totalorder %s414_s29, %s564_s1 }
  0x10   :  { %p420_p2 = pnand %p418_p1, %p415_p0 }
  0x12   :  { %423 = shalt.err (!%p420_p2)
}
  0x13   :  { %s424_s7 = scalar_lea.vmem %s54_s26, 2048  ;;  %p429_p4 = scmp.lt.s32.totalorder %s54_s26, %s54_s26 }
  0x14   :  { %p425_p3 = scmp.ne.s32.totalorder %s54_s26, %s424_s7  ;;  %p430_p5 = scmp.lt.s32.totalorder %s424_s7, %s424_s7 }
  0x16   :  { %p431_p6 = por %p430_p5, %p429_p4 }
  0x18   :  { %p432_p7 = pnand %p431_p6, %p425_p3 }
  0x1a   :  { %435 = shalt.err (!%p432_p7)
}
  0x1b   :  { %s472_s0 = smov 128   ;;  %s473_s8 = smov 8  }
  0x1c   :  { %59 = dma.hbm_to_vmem [thread:$0]  %s564_s1, 2048, %s54_s26, [#allocation7], %s472_s0, %s472_s0, %s473_s8  }
  0x1d   :  { %458 = dma.done.wait [#allocation4], 1024  }
  0x1e   :  { %459 = vsyncadd [#allocation4], 4294966272 }
  0x1f   :  { %460 = dma.done.wait [#allocation7], 2048  }
  0x20   :  { %461 = vsyncadd [#allocation7], 4294965248  ;;  %v474_v0 = vmov 0.0|0.0   ;;  %vm475_vm0 = vmmov 0   ;;  %v476_v1 = vmov 0.0   ;;  %v89_v2 = vlaneseq  ;;  %v187_v4 = vld [vmem:[#allocation6] sm:$0xff] }
  0x21   :  { %376 = vmatprep.subr.bf16.mxu0 %v474_v0  ;;  %373 = vmatprep.mubr.msk.f32.mxu0 %vm475_vm0, %v476_v1  ;;  %v188_v5 = vld [vmem:[#allocation6 + $0x8] sm:$0xff]  ;;  %v189_v6 = vld [vmem:[#allocation6 + $0x10] sm:$0xff]  ;;  %v190_v8 = vld [vmem:[#allocation6 + $0x18] sm:$0xff]  ;;  %vm219_vm2 = vcmask 1041409   ;;  %vm221_vm3 = vcmask 1042434   ;;  %vm223_vm4 = vcmask 1043459  }
  0x22   :  { %v514_v3 = vshrl.u32 %v89_v2, 7  ;;  %v377_v7 = vpack.c.bf16 %v188_v5, %v187_v4  ;;  %v191_v9 = vld [vmem:[#allocation6 + $0x20] sm:$0xff]  ;;  %v380_v10 = vpack.c.bf16 %v190_v8, %v189_v6  ;;  %v192_v11 = vld [vmem:[#allocation6 + $0x28] sm:$0xff]  ;;  %v193_v12 = vld [vmem:[#allocation6 + $0x30] sm:$0xff]  ;;  %vm225_vm5 = vcmask 1044484   ;;  %s477_s12 = smov [#allocation8]  }
  0x23   :  { %v194_v13 = vld [vmem:[#allocation6 + $0x38] sm:$0xff]  ;;  %v518_v14 = vld [vmem:[#allocation6 + $0x40] sm:$0xff]  ;;  %v520_v15 = vld [vmem:[#allocation6 + $0x48] sm:$0xff]  ;;  %v383_v18 = vpack.c.bf16 %v192_v11, %v191_v9  ;;  %vm227_vm6 = vcmask 1045509   ;;  %vm229_vm7 = vcmask 1046534   ;;  %vm231_vm8 = vcmask 1047559  }
  0x24   :  { %378 = vmatpush3.bf16.msra.mxu0 %v377_v7  ;;  %vm93_vm1 = vcmp.lt.s32.totalorder %v514_v3, 2  ;;  %v80_v16 = vld [vmem:[#allocation3] sm:$0xff]  ;;  %v81_v17 = vld [vmem:[#allocation3 + $0x8] sm:$0xff]  ;;  %v386_v19 = vpack.c.bf16 %v194_v13, %v193_v12  ;;  %v82_v20 = vld [vmem:[#allocation3 + $0x10] sm:$0xff]  ;;  %v389_v25 = vpack.c.bf16 %v520_v15, %v518_v14  ;;  %s312_s13 = sshll.u32 %s477_s12, 4  ;;  %s313_s13 = int_to_ptr.vmem [resolvable:$true] %s312_s13 }
  0x25   :  { %379 = vmatprep.subr.bf16.mxu0 %v474_v0  ;;  %v83_v21 = vld [vmem:[#allocation3 + $0x18] sm:$0xff]  ;;  %v84_v22 = vld [vmem:[#allocation3 + $0x20] sm:$0xff]  ;;  %v96_v23 = vsel %vm93_vm1, %v80_v16, 0.0  ;;  %v97_v24 = vsel %vm93_vm1, %v81_v17, 0.0  ;;  %v85_v26 = vld [vmem:[#allocation3 + $0x28] sm:$0xff]  ;;  %v98_v29 = vsel %vm93_vm1, %v82_v20, 0.0  ;;  %p441_p9 = scmp.lt.s32.totalorder %s313_s13, %s313_s13 }
  0x26   :  { %v86_v27 = vld [vmem:[#allocation3 + $0x30] sm:$0xff]  ;;  %v87_v28 = vld [vmem:[#allocation3 + $0x38] sm:$0xff]  ;;  %v99_v30 = vsel %vm93_vm1, %v83_v21, 0.0  ;;  %v100_v31 = vsel %vm93_vm1, %v84_v22, 0.0  ;;  %v101_v32 = vsel %vm93_vm1, %v85_v26, 0.0  ;;  %v139_v35 = vrot.slane %v96_v23, 4 }
  0x27   :  { %v102_v33 = vsel %vm93_vm1, %v86_v27, 0.0  ;;  %v103_v34 = vsel %vm93_vm1, %v87_v28, 0.0  ;;  %v145_v36 = vrot.slane %v97_v24, 4  ;;  %v151_v37 = vrot.slane %v98_v29, 4  ;;  %v197_v60 = vld [vmem:[#allocation6 + $0x50] sm:$0xff]  ;;  %v198_v61 = vld [vmem:[#allocation6 + $0x58] sm:$0xff] }
  0x28   :  { %381 = vmatpush3.bf16.msra.mxu0 %v380_v10  ;;  %v157_v38 = vrot.slane %v99_v30, 4  ;;  %v163_v39 = vrot.slane %v100_v31, 4  ;;  %v140_v40 = vadd.f32 %v139_v35, %v96_v23  ;;  %v169_v41 = vrot.slane %v101_v32, 4  ;;  %v201_v28 = vld [vmem:[#allocation6 + $0x70] sm:$0xff]  ;;  %s436_s14 = scalar_lea.vmem %s313_s13, 128 }
  0x29   :  { %382 = vmatprep.subr.bf16.mxu0 %v474_v0  ;;  %v175_v42 = vrot.slane %v102_v33, 4  ;;  %v181_v43 = vrot.slane %v103_v34, 4  ;;  %v146_v44 = vadd.f32 %v145_v36, %v97_v24  ;;  %v152_v45 = vadd.f32 %v151_v37, %v98_v29  ;;  %v202_v29 = vld [vmem:[#allocation6 + $0x78] sm:$0xff]  ;;  %v203_v37 = vld [vmem:[%s565_s2] sm:$0x1]  ;;  %p437_p8 = scmp.ne.s32.totalorder %s313_s13, %s436_s14  ;;  %p442_p10 = scmp.lt.s32.totalorder %s436_s14, %s436_s14 }
  0x2a   :  { %v158_v46 = vadd.f32 %v157_v38, %v99_v30  ;;  %v164_v47 = vadd.f32 %v163_v39, %v100_v31  ;;  %v141_v48 = vrot.slane %v140_v40, 2  ;;  %v170_v49 = vadd.f32 %v169_v41, %v101_v32 }
  0x2b   :  { %v176_v50 = vadd.f32 %v175_v42, %v102_v33  ;;  %v182_v51 = vadd.f32 %v181_v43, %v103_v34  ;;  %v147_v52 = vrot.slane %v146_v44, 2  ;;  %v153_v53 = vrot.slane %v152_v45, 2  ;;  %p443_p11 = por %p442_p10, %p441_p9 }
  0x2c   :  { %384 = vmatpush3.bf16.msra.mxu0 %v383_v18  ;;  %v159_v54 = vrot.slane %v158_v46, 2  ;;  %v165_v55 = vrot.slane %v164_v47, 2  ;;  %v142_v56 = vadd.f32 %v141_v48, %v140_v40  ;;  %v171_v57 = vrot.slane %v170_v49, 2  ;;  %v199_v18 = vld [vmem:[#allocation6 + $0x60] sm:$0xff] }
  0x2d   :  { %385 = vmatprep.subr.bf16.mxu0 %v474_v0  ;;  %v177_v58 = vrot.slane %v176_v50, 2  ;;  %v183_v59 = vrot.slane %v182_v51, 2  ;;  %v148_v62 = vadd.f32 %v147_v52, %v146_v44  ;;  %v154_v63 = vadd.f32 %v153_v53, %v152_v45  ;;  %p444_p12 = pnand %p443_p11, %p437_p8 }
  0x2e   :  { %v160_v1 = vadd.f32 %v159_v54, %v158_v46  ;;  %v166_v2 = vadd.f32 %v165_v55, %v164_v47  ;;  %v143_v4 = vrot.slane %v142_v56, 1  ;;  %v172_v5 = vadd.f32 %v171_v57, %v170_v49 }
  0x2f   :  { %v178_v6 = vadd.f32 %v177_v58, %v176_v50  ;;  %v149_v7 = vrot.slane %v148_v62, 1  ;;  %v155_v8 = vrot.slane %v154_v63, 1  ;;  %v392_v11 = vpack.c.bf16 %v198_v61, %v197_v60 }
  0x30   :  { %387 = vmatpush3.bf16.msra.mxu0 %v386_v19  ;;  %v161_v9 = vrot.slane %v160_v1, 1  ;;  %v167_v10 = vrot.slane %v166_v2, 1  ;;  %v144_v12 = vadd.f32 %v143_v4, %v142_v56  ;;  %v173_v13 = vrot.slane %v172_v5, 1  ;;  %v200_v19 = vld [vmem:[#allocation6 + $0x68] sm:$0xff] }
  0x31   :  { %388 = vmatprep.subr.bf16.mxu0 %v474_v0  ;;  %v150_v14 = vadd.f32 %v149_v7, %v148_v62  ;;  %v156_v15 = vadd.f32 %v155_v8, %v154_v63  ;;  %v184_v17 = vadd.f32 %v183_v59, %v182_v51  ;;  %v179_v21 = vrot.slane %v178_v6, 1 }
  0x32   :  { %v162_v16 = vadd.f32 %v161_v9, %v160_v1  ;;  %v168_v20 = vadd.f32 %v167_v10, %v166_v2  ;;  %v174_v22 = vadd.f32 %v173_v13, %v172_v5  ;;  %v395_v26 = vpack.c.bf16 %v200_v19, %v199_v18 }
  0x33   :  { %v220_v23 = vsel %vm219_vm2, %v150_v14, %v144_v12  ;;  %v180_v30 = vadd.f32 %v179_v21, %v178_v6  ;;  %v398_v33 = vpack.c.bf16 %v202_v29, %v201_v28  ;;  %v204_v38 = vmul.f32 8.0, %v203_v37 }
  0x34   :  { %390 = vmatpush3.bf16.msra.mxu0 %v389_v25  ;;  %v222_v24 = vsel %vm221_vm3, %v156_v15, %v220_v23  ;;  %v185_v25 = vrot.slane %v184_v17, 1  ;;  %v208_v39 = vsub.s32 0, %v514_v3 }
  0x35   :  { %391 = vmatprep.subr.bf16.mxu0 %v474_v0  ;;  %v224_v27 = vsel %vm223_vm4, %v162_v16, %v222_v24 }
  0x36   :  { %v226_v31 = vsel %vm225_vm5, %v168_v20, %v224_v27  ;;  %v186_v34 = vadd.f32 %v185_v25, %v184_v17  ;;  %v209_v40 = vrot.slane %v204_v38, %v208_v39 }
  0x37   :  { %v228_v32 = vsel %vm227_vm6, %v174_v22, %v226_v31 }
  0x38   :  { %393 = vmatpush3.bf16.msra.mxu0 %v392_v11  ;;  %v230_v35 = vsel %vm229_vm7, %v180_v30, %v228_v32 }
  0x39   :  { %394 = vmatprep.subr.bf16.mxu0 %v474_v0  ;;  %v232_v36 = vsel %vm231_vm8, %v186_v34, %v230_v35 }
  0x3c   :  { %396 = vmatpush3.bf16.msra.mxu0 %v395_v26 }
  0x3d   :  { %397 = vmatprep.subr.bf16.mxu0 %v474_v0 }
  0x40   :  { %399 = vmatpush3.bf16.msra.mxu0 %v398_v33 }
  0x43   :  { %374 = vmatmul.mubr.f32.vlgmr.msra.gmra.mrb[0].mxu0 %v232_v36 }
 0x116   :  { %v300_v41 = vpop.f32.mrb[0].mxu0 }
 0x117   :  { %v301_v42 = vadd.f32 %v300_v41, %v209_v40  ;;  %v375_v43 = vpop.f32.mrb[1].mxu0 }
 0x119   :  { %v304_v44 = vmax.f32 %v301_v42, 0.0 }
 0x11b   :  { %305 = vst [vmem:[#allocation8] sm:$0xff] %v304_v44 }
 0x11c   :  { %447 = shalt.err (!%p444_p12)
}
 0x11d   :  { %s448_s16 = scalar_lea.hbm %s566_s3, 128 }
 0x11e   :  { %p449_p13 = scmp.ne.s32.totalorder %s566_s3, %s448_s16  ;;  %p452_p0 = scmp.lt.u32.totalorder %s448_s16, %s566_s3 }
 0x120   :  { %p454_p1 = pnand %p452_p0, %p449_p13 }
 0x122   :  { %457 = shalt.err (!%p454_p1)
}
 0x123   :  { %315 = dma.vmem_to_hbm [thread:$0]  %s313_s13, 128, %s566_s3, [#allocation5]  }
 0x124   :  { %462 = dma.done.wait [#allocation5], 128  }
 0x125   :  { %463 = vsyncadd [#allocation5], 4294967168 }
 0x126   :  { %319 = vsyncpa [#allocation4], 1 }
 0x127   :  { %320 = vsyncpa [#allocation7], 1 }
 0x128   :  { %321 = vsyncpa [#allocation5], 1 }

</bundles_post_ra>
